<compile_context>
chip_gen: v7x
topology: tpu7x:2x2x1
jax: 0.10.0
libtpu: 0.0.40
codegen_flags: <defaults>
</compile_context>

<pallas_src>
import functools

import jax
import jax.numpy as jnp
from jax.experimental import pallas as pl
from jax.experimental.pallas import tpu as pltpu


_HBM_BYTES_PER_STEP = 2 * 1024 * 1024    # amortize ~0.35us/step grid overhead
_VMEM_TILE_BUDGET = 20 * 1024 * 1024     # dbl-buffered inputs + f32 intermediates
_VMEM_LIMIT_BYTES = 48 * 1024 * 1024     # > v5e 16MiB default scoped, < v7x 64MiB phys


def _choose_tile(c, hw, x_bytes, cls_bytes, w_bytes, max_tile):
    """Pick the pixel-tile width (lanes) for one grid step."""
    c_pad = ((c + 7) // 8) * 8
    # Actual HBM bytes moved per pixel (logits + class id + weight).
    hbm_px = c * x_bytes + cls_bytes + w_bytes
    # VMEM bytes per pixel: 2x double-buffered inputs (sublane-padded) plus a
    # conservative ~8 live f32 (C_pad, T) intermediates (x, onehot, e, p, ...).
    vmem_px = 2 * (c_pad * x_bytes + cls_bytes + w_bytes) + 8 * c_pad * 4
    tile = min(_HBM_BYTES_PER_STEP // hbm_px, _VMEM_TILE_BUDGET // vmem_px)
    if max_tile is not None:
        tile = min(tile, max_tile)
    tile = max(128, (tile // 128) * 128)
    if hw <= tile:
        return int(hw)                 # single full-width tile per image
    return int(tile)


def _combined_loss_kernel(x_ref, cls_ref, w_ref,
                          num_out, den_out, ce_out, w_out,
                          *, hw, tile, n_tiles_total, needs_mask):
    """One grid step = one (C, TILE) logits slab of one (batch, pixel-split).

    Output blocks act as accumulators (resident across the inner tile axis):
      num_out : (C, 1)  sum over pixels of softmax * onehot   (dice numerator)
      den_out : (C, 1)  sum over pixels of softmax + onehot   (dice denominator)
      ce_out  : (1, 1)  per-pixel cross-entropy sum
      w_out   : (1, 1)  per-pixel weight sum
    """
    i = pl.program_id(2)

    @pl.when(i == 0)
    def _():
        num_out[...] = jnp.zeros_like(num_out)
        den_out[...] = jnp.zeros_like(den_out)
        ce_out[...] = jnp.zeros_like(ce_out)
        w_out[...] = jnp.zeros_like(w_out)

    x = x_ref[...].astype(jnp.float32)        # (C, T) logits (native-dtype DMA)
    cls = cls_ref[...].astype(jnp.int32)      # (1, T) class ids (int8/int32 DMA)
    wv = w_ref[...].astype(jnp.float32)       # (1, T) per-pixel weight

    c = x.shape[0]

    # Rebuild one-hot target in-kernel (channel iota == class id); saves a full
    # (C, T) f32 HBM stream.
    onehot = (jax.lax.broadcasted_iota(jnp.int32, (c, tile), 0) == cls
              ).astype(jnp.float32)           # (C, T)

    # Softmax over the channel (sublane) axis; single (1,T) divide.
    m = jnp.max(x, axis=0, keepdims=True)     # (1, T)
    e = jnp.exp(x - m)                        # (C, T)
    s = jnp.sum(e, axis=0, keepdims=True)     # (1, T)
    p = e * (1.0 / s)                         # softmax(X, dim=C)

    # Cross entropy per pixel: logsumexp(x) - x[class].
    lse = m + jnp.log(s)                                           # (1, T)
    ce_lane = lse - jnp.sum(onehot * x, axis=0, keepdims=True)     # (1, T)

    num_step = p * onehot
    den_step = p + onehot

    def _accum(ns, ds, cl, wl):
        num_out[...] += jnp.sum(ns, axis=1, keepdims=True)    # (C, 1)
        den_out[...] += jnp.sum(ds, axis=1, keepdims=True)    # (C, 1)
        ce_out[...] += jnp.sum(cl, axis=1, keepdims=True)     # (1, 1)
        w_out[...] += jnp.sum(wl, axis=1, keepdims=True)      # (1, 1)

    if needs_mask:
        # Only the last *global* tile can read past H*W -> keep the masking work
        # out of the hot path with a two-branch body.
        g = pl.program_id(1) * pl.num_programs(2) + i   # global tile index

        @pl.when(g != n_tiles_total - 1)
        def _():
            _accum(num_step, den_step, ce_lane, wv)

        @pl.when(g == n_tiles_total - 1)
        def _():
            valid = hw - g * tile
            lane = jax.lax.broadcasted_iota(jnp.int32, (1, tile), 1)
            mask = lane < valid
            # jnp.where (select) on purpose: OOB lanes may contain NaN/Inf.
            _accum(jnp.where(mask, num_step, 0.0),
                   jnp.where(mask, den_step, 0.0),
                   jnp.where(mask, ce_lane, 0.0),
                   jnp.where(mask, wv, 0.0))
    else:
        _accum(num_step, den_step, ce_lane, wv)


def combined_loss_from_classes(x_nchw, cls_nhw, weight_nhw, *,
                               max_tile=None, pixel_splits=None):
    """CombinedLoss with the target given as integer class indices (N, H, W).

    Preferred entry point: avoids reading a full (N, C, H, W) one-hot from HBM.
    `weight_nhw` is streamed in its native dtype (pass bf16 yourself if tolerable).
    """
    n, c, h, wd = x_nchw.shape
    hw = h * wd

    # Free reshapes only — no transpose, no dtype widening in HBM.
    x = x_nchw.reshape(n, c, hw)
    cls_dtype = jnp.int8 if c <= 127 else jnp.int32
    cls = cls_nhw.reshape(n, 1, hw).astype(cls_dtype)
    w = weight_nhw.reshape(n, 1, hw)

    tile = _choose_tile(c, hw, x.dtype.itemsize, cls.dtype.itemsize,
                        w.dtype.itemsize, max_tile)
    n_tiles_total = pl.cdiv(hw, tile)
    needs_mask = (hw % tile) != 0

    # Megacore helper: if the batch axis alone can't feed 2 TensorCores (odd N,
    # in particular N=1), split the pixel-tile axis 2 ways as a parallel axis.
    if pixel_splits is None:
        pixel_splits = 2 if (n % 2 == 1) else 1
    if pixel_splits >= 2 and n_tiles_total % pixel_splits == 0:
        splits = pixel_splits
    else:
        splits = 1
    tiles_per_split = n_tiles_total // splits

    kernel = functools.partial(_combined_loss_kernel, hw=hw, tile=tile,
                               n_tiles_total=n_tiles_total,
                               needs_mask=needs_mask)

    out_shape = (
        jax.ShapeDtypeStruct((n, splits, c, 1), jnp.float32),   # dice numerator
        jax.ShapeDtypeStruct((n, splits, c, 1), jnp.float32),   # dice denominator
        jax.ShapeDtypeStruct((n, splits, 1, 1), jnp.float32),   # CE sum
        jax.ShapeDtypeStruct((n, splits, 1, 1), jnp.float32),   # weight sum
    )

    def in_idx(b, sp, i):
        return (b, 0, sp * tiles_per_split + i)

    def out_idx(b, sp, i):
        return (b, sp, 0, 0)

    num_p, den_p, ce_p, w_p = pl.pallas_call(
        kernel,
        out_shape=out_shape,
        grid_spec=pltpu.PrefetchScalarGridSpec(
            num_scalar_prefetch=0,
            grid=(n, splits, tiles_per_split),
            in_specs=[
                pl.BlockSpec((None, c, tile), in_idx),   # logits
                pl.BlockSpec((None, 1, tile), in_idx),   # class ids
                pl.BlockSpec((None, 1, tile), in_idx),   # weight
            ],
            out_specs=[
                pl.BlockSpec((None, None, c, 1), out_idx),
                pl.BlockSpec((None, None, c, 1), out_idx),
                pl.BlockSpec((None, None, 1, 1), out_idx),
                pl.BlockSpec((None, None, 1, 1), out_idx),
            ],
        ),
        compiler_params=pltpu.CompilerParams(
            dimension_semantics=("parallel", "parallel", "arbitrary"),
            vmem_limit_bytes=_VMEM_LIMIT_BYTES),
    )(x, cls, w)

    # Tiny final combine over (N, splits) partials — a few scalars, done in XLA.
    n_pix = jnp.float32(n * hw)
    eps = jnp.float32(1e-4)
    numer = 2.0 * jnp.sum(num_p[..., 0], axis=(0, 1))       # (C,)
    denom = jnp.sum(den_p[..., 0], axis=(0, 1)) + eps       # (C,)
    dice = jnp.sum(1.0 - numer / denom) / c                 # scalar
    ce_mean = jnp.sum(ce_p) / n_pix                         # scalar
    w_mean = jnp.sum(w_p) / n_pix                           # scalar
    # Matches PyTorch quirk: weight multiplies the already-reduced scalar CE,
    # so y1 = mean(CE_scalar * weight) = CE_mean * weight_mean.
    return ce_mean * w_mean + 0.5 * dice


def combined_loss(x_nchw, target_onehot_nchw, weight_nhw, *,
                  max_tile=None, pixel_splits=None):
    """CombinedLoss.forward(X, target, weight) with a one-hot NCHW target.

    NOTE: collapses the target to argmax class indices — exact for one-hot
    targets (as the PyTorch module expects); soft/label-smoothed targets would
    make the Dice term diverge.  Prefer combined_loss_from_classes() when class
    indices exist upstream (avoids a full extra (N,C,H,W) HBM pass here).
    """
    cls = jnp.argmax(target_onehot_nchw, axis=1).astype(jnp.int32)
    return combined_loss_from_classes(x_nchw, cls, weight_nhw,
                                      max_tile=max_tile,
                                      pixel_splits=pixel_splits)


def _reference(x, t, w):
    """Pure-JAX reference mirroring the PyTorch CombinedLoss semantics."""
    p = jax.nn.softmax(x, axis=1)
    numer = 2.0 * jnp.sum(p * t, axis=(0, 2, 3))
    denom = jnp.sum(p + t, axis=(0, 2, 3)) + 0.0001
    dice = jnp.sum(1.0 - numer / denom) / x.shape[1]
    logp = jax.nn.log_softmax(x, axis=1)
    ce = -jnp.mean(jnp.sum(t * logp, axis=1))       # nn.CrossEntropyLoss (mean)
    y1 = jnp.mean(ce * w)                           # mean(mul(CE, weight))
    return y1 + 0.5 * dice


if __name__ == "__main__":
    key = jax.random.PRNGKey(0)
    keys = jax.random.split(key, 9)

    # --- test 1: small NCHW, single full-width tile, batch-parallel only ---
    N, C, H, W = 2, 4, 16, 16
    x = jax.random.normal(keys[0], (N, C, H, W), dtype=jnp.float32)
    cls = jax.random.randint(keys[1], (N, H, W), 0, C)
    target = jnp.transpose(jax.nn.one_hot(cls, C, dtype=jnp.float32), (0, 3, 1, 2))
    weight = jax.random.uniform(keys[2], (N, H, W), dtype=jnp.float32,
                                minval=0.5, maxval=1.5)

    y = jax.block_until_ready(combined_loss(x, target, weight))
    y_ref = jax.block_until_ready(_reference(x, target, weight))
    assert jnp.allclose(y, y_ref, rtol=1e-5, atol=2e-5), (y, y_ref)

    # --- test 2: N=1 -> 2-way pixel split, non-divisible pixel count -> tail mask ---
    N2, C2, H2, W2 = 1, 3, 20, 20           # H*W = 400 = 3*128 + 16, 4 tiles @128
    x2 = jax.random.normal(keys[3], (N2, C2, H2, W2), dtype=jnp.float32)
    cls2 = jax.random.randint(keys[4], (N2, H2, W2), 0, C2)
    target2 = jnp.transpose(jax.nn.one_hot(cls2, C2, dtype=jnp.float32), (0, 3, 1, 2))
    weight2 = jax.random.uniform(keys[5], (N2, H2, W2), dtype=jnp.float32,
                                 minval=0.5, maxval=1.5)

    y2 = jax.block_until_ready(combined_loss(x2, target2, weight2, max_tile=128))
    y2_ref = jax.block_until_ready(_reference(x2, target2, weight2))
    assert jnp.allclose(y2, y2_ref, rtol=1e-5, atol=2e-5), (y2, y2_ref)

    # --- test 3: class-index entry point, odd tile count -> split fallback + mask ---
    N3, C3, H3, W3 = 1, 5, 24, 24           # H*W = 576 -> 3 tiles @256 (splits=1)
    x3 = jax.random.normal(keys[6], (N3, C3, H3, W3), dtype=jnp.float32)
    cls3 = jax.random.randint(keys[7], (N3, H3, W3), 0, C3)
    target3 = jnp.transpose(jax.nn.one_hot(cls3, C3, dtype=jnp.float32), (0, 3, 1, 2))
    weight3 = jax.random.uniform(keys[8], (N3, H3, W3), dtype=jnp.float32,
                                 minval=0.5, maxval=1.5)

    y3 = jax.block_until_ready(
        combined_loss_from_classes(x3, cls3, weight3, max_tile=256))
    y3_ref = jax.block_until_ready(_reference(x3, target3, weight3))
    assert jnp.allclose(y3, y3_ref, rtol=1e-5, atol=2e-5), (y3, y3_ref)

    print("KERNEL_OK")
</pallas_src>

<mosaic_0001>
module attributes {stable_mosaic.version = 11 : i64} {
  func.func @_combined_loss_kernel(%arg0: i32, %arg1: i32, %arg2: i32, %arg3: memref<1x4x256xf32, #tpu.memory_space<vmem>>, %arg4: memref<1x1x256xi8, #tpu.memory_space<vmem>>, %arg5: memref<1x1x256xf32, #tpu.memory_space<vmem>>, %arg6: memref<1x1x4x1xf32, #tpu.memory_space<vmem>>, %arg7: memref<1x1x4x1xf32, #tpu.memory_space<vmem>>, %arg8: memref<1x1x1x1xf32, #tpu.memory_space<vmem>>, %arg9: memref<1x1x1x1xf32, #tpu.memory_space<vmem>>) attributes {dimension_semantics = [#tpu.dimension_semantics<parallel>, #tpu.dimension_semantics<parallel>, #tpu.dimension_semantics<arbitrary>], iteration_bounds = array<i64: 2, 1, 1>, scalar_prefetch = 0 : i64, scratch_operands = 0 : i64, tpu.core_type = #tpu.core_type<tc>, window_params = [{transform_indices = @transform_0, window_bounds = array<i64: 1, 4, 256>}, {transform_indices = @transform_1, window_bounds = array<i64: 1, 1, 256>}, {transform_indices = @transform_2, window_bounds = array<i64: 1, 1, 256>}, {transform_indices = @transform_3, window_bounds = array<i64: 1, 1, 4, 1>}, {transform_indices = @transform_4, window_bounds = array<i64: 1, 1, 4, 1>}, {transform_indices = @transform_5, window_bounds = array<i64: 1, 1, 1, 1>}, {transform_indices = @transform_6, window_bounds = array<i64: 1, 1, 1, 1>}]} {
    %c0_i32 = arith.constant 0 : i32
    %0 = arith.cmpi eq, %arg2, %c0_i32 : i32
    %1 = arith.extui %0 : i1 to i32
    %c0_i32_0 = arith.constant 0 : i32
    %2 = arith.cmpi ne, %1, %c0_i32_0 : i32
    scf.if %2 {
      %cst_48 = arith.constant 0.000000e+00 : f32
      %66 = vector.broadcast %cst_48 : f32 to vector<4x1xf32>
      %c0_49 = arith.constant 0 : index
      %c0_50 = arith.constant 0 : index
      %c0_51 = arith.constant 0 : index
      %c0_52 = arith.constant 0 : index
      %67 = vector.load %arg6[%c0_49, %c0_50, %c0_51, %c0_52] : memref<1x1x4x1xf32, #tpu.memory_space<vmem>>, vector<1x1x4x1xf32>
      %68 = vector.shape_cast %67 : vector<1x1x4x1xf32> to vector<4x1xf32>
      %69 = vector.shape_cast %66 : vector<4x1xf32> to vector<1x1x4x1xf32>
      tpu.vector_store %arg6[%c0_49, %c0_50, %c0_51, %c0_52], %69 {strides = array<i32>} : memref<1x1x4x1xf32, #tpu.memory_space<vmem>>, vector<1x1x4x1xf32>,
      %cst_53 = arith.constant 0.000000e+00 : f32
      %70 = vector.broadcast %cst_53 : f32 to vector<4x1xf32>
      %c0_54 = arith.constant 0 : index
      %c0_55 = arith.constant 0 : index
      %c0_56 = arith.constant 0 : index
      %c0_57 = arith.constant 0 : index
      %71 = vector.load %arg7[%c0_54, %c0_55, %c0_56, %c0_57] : memref<1x1x4x1xf32, #tpu.memory_space<vmem>>, vector<1x1x4x1xf32>
      %72 = vector.shape_cast %71 : vector<1x1x4x1xf32> to vector<4x1xf32>
      %73 = vector.shape_cast %70 : vector<4x1xf32> to vector<1x1x4x1xf32>
      tpu.vector_store %arg7[%c0_54, %c0_55, %c0_56, %c0_57], %73 {strides = array<i32>} : memref<1x1x4x1xf32, #tpu.memory_space<vmem>>, vector<1x1x4x1xf32>,
      %cst_58 = arith.constant 0.000000e+00 : f32
      %74 = vector.broadcast %cst_58 : f32 to vector<1x1xf32>
      %c0_59 = arith.constant 0 : index
      %c0_60 = arith.constant 0 : index
      %c0_61 = arith.constant 0 : index
      %c0_62 = arith.constant 0 : index
      %75 = vector.load %arg8[%c0_59, %c0_60, %c0_61, %c0_62] : memref<1x1x1x1xf32, #tpu.memory_space<vmem>>, vector<1x1x1x1xf32>
      %76 = vector.shape_cast %75 : vector<1x1x1x1xf32> to vector<1x1xf32>
      %77 = vector.shape_cast %74 : vector<1x1xf32> to vector<1x1x1x1xf32>
      tpu.vector_store %arg8[%c0_59, %c0_60, %c0_61, %c0_62], %77 {strides = array<i32>} : memref<1x1x1x1xf32, #tpu.memory_space<vmem>>, vector<1x1x1x1xf32>,
      %cst_63 = arith.constant 0.000000e+00 : f32
      %78 = vector.broadcast %cst_63 : f32 to vector<1x1xf32>
      %c0_64 = arith.constant 0 : index
      %c0_65 = arith.constant 0 : index
      %c0_66 = arith.constant 0 : index
      %c0_67 = arith.constant 0 : index
      %79 = vector.load %arg9[%c0_64, %c0_65, %c0_66, %c0_67] : memref<1x1x1x1xf32, #tpu.memory_space<vmem>>, vector<1x1x1x1xf32>
      %80 = vector.shape_cast %79 : vector<1x1x1x1xf32> to vector<1x1xf32>
      %81 = vector.shape_cast %78 : vector<1x1xf32> to vector<1x1x1x1xf32>
      tpu.vector_store %arg9[%c0_64, %c0_65, %c0_66, %c0_67], %81 {strides = array<i32>} : memref<1x1x1x1xf32, #tpu.memory_space<vmem>>, vector<1x1x1x1xf32>,
    } else {
    }
    %c0 = arith.constant 0 : index
    %c0_1 = arith.constant 0 : index
    %c0_2 = arith.constant 0 : index
    %3 = vector.load %arg3[%c0, %c0_1, %c0_2] : memref<1x4x256xf32, #tpu.memory_space<vmem>>, vector<1x4x256xf32>
    %4 = vector.shape_cast %3 : vector<1x4x256xf32> to vector<4x256xf32>
    %c0_3 = arith.constant 0 : index
    %c0_4 = arith.constant 0 : index
    %c0_5 = arith.constant 0 : index
    %5 = vector.load %arg4[%c0_3, %c0_4, %c0_5] : memref<1x1x256xi8, #tpu.memory_space<vmem>>, vector<1x1x256xi8>
    %6 = vector.shape_cast %5 : vector<1x1x256xi8> to vector<1x256xi8>
    %7 = arith.extsi %6 : vector<1x256xi8> to vector<1x256xi32>
    %c0_6 = arith.constant 0 : index
    %c0_7 = arith.constant 0 : index
    %c0_8 = arith.constant 0 : index
    %8 = vector.load %arg5[%c0_6, %c0_7, %c0_8] : memref<1x1x256xf32, #tpu.memory_space<vmem>>, vector<1x1x256xf32>
    %9 = vector.shape_cast %8 : vector<1x1x256xf32> to vector<1x256xf32>
    %10 = tpu.iota {dimensions = array<i32: 0>} : vector<4x256xi32>
    %11 = vector.broadcast %7 : vector<1x256xi32> to vector<4x256xi32>
    %12 = arith.cmpi eq, %10, %11 : vector<4x256xi32>
    %13 = arith.extui %12 : vector<4x256xi1> to vector<4x256xi32>
    %14 = arith.sitofp %13 : vector<4x256xi32> to vector<4x256xf32>
    %cst = arith.constant dense<0xFF800000> : vector<256xf32>
    %15 = vector.multi_reduction <maximumf>, %4, %cst [0] : vector<4x256xf32> to vector<256xf32>
    %16 = vector.shape_cast %15 : vector<256xf32> to vector<1x256xf32>
    %17 = vector.broadcast %16 : vector<1x256xf32> to vector<4x256xf32>
    %18 = arith.subf %4, %17 : vector<4x256xf32>
    %19 = math.exp %18 : vector<4x256xf32>
    %cst_9 = arith.constant dense<0.000000e+00> : vector<256xf32>
    %20 = vector.multi_reduction <add>, %19, %cst_9 [0] : vector<4x256xf32> to vector<256xf32>
    %21 = vector.shape_cast %20 : vector<256xf32> to vector<1x256xf32>
    %cst_10 = arith.constant 1.000000e+00 : f32
    %22 = vector.broadcast %cst_10 : f32 to vector<1x256xf32>
    %23 = arith.divf %22, %21 : vector<1x256xf32>
    %24 = vector.broadcast %23 : vector<1x256xf32> to vector<4x256xf32>
    %25 = arith.mulf %19, %24 : vector<4x256xf32>
    %26 = math.log %21 : vector<1x256xf32>
    %27 = arith.addf %16, %26 : vector<1x256xf32>
    %28 = arith.mulf %14, %4 : vector<4x256xf32>
    %cst_11 = arith.constant dense<0.000000e+00> : vector<256xf32>
    %29 = vector.multi_reduction <add>, %28, %cst_11 [0] : vector<4x256xf32> to vector<256xf32>
    %30 = vector.shape_cast %29 : vector<256xf32> to vector<1x256xf32>
    %31 = arith.subf %27, %30 : vector<1x256xf32>
    %32 = arith.mulf %25, %14 : vector<4x256xf32>
    %33 = arith.addf %25, %14 : vector<4x256xf32>
    %c0_12 = arith.constant 0 : index
    %c0_13 = arith.constant 0 : index
    %c0_14 = arith.constant 0 : index
    %c0_15 = arith.constant 0 : index
    %34 = vector.load %arg6[%c0_12, %c0_13, %c0_14, %c0_15] : memref<1x1x4x1xf32, #tpu.memory_space<vmem>>, vector<1x1x4x1xf32>
    %35 = vector.shape_cast %34 : vector<1x1x4x1xf32> to vector<4x1xf32>
    %cst_16 = arith.constant dense<0.000000e+00> : vector<4xf32>
    %36 = vector.multi_reduction <add>, %32, %cst_16 [1] : vector<4x256xf32> to vector<4xf32>
    %37 = vector.shape_cast %36 : vector<4xf32> to vector<4x1xf32>
    %38 = arith.addf %35, %37 : vector<4x1xf32>
    %c0_17 = arith.constant 0 : index
    %c0_18 = arith.constant 0 : index
    %c0_19 = arith.constant 0 : index
    %c0_20 = arith.constant 0 : index
    %39 = vector.load %arg6[%c0_17, %c0_18, %c0_19, %c0_20] : memref<1x1x4x1xf32, #tpu.memory_space<vmem>>, vector<1x1x4x1xf32>
    %40 = vector.shape_cast %39 : vector<1x1x4x1xf32> to vector<4x1xf32>
    %41 = vector.shape_cast %38 : vector<4x1xf32> to vector<1x1x4x1xf32>
    tpu.vector_store %arg6[%c0_17, %c0_18, %c0_19, %c0_20], %41 {strides = array<i32>} : memref<1x1x4x1xf32, #tpu.memory_space<vmem>>, vector<1x1x4x1xf32>,
    %c0_21 = arith.constant 0 : index
    %c0_22 = arith.constant 0 : index
    %c0_23 = arith.constant 0 : index
    %c0_24 = arith.constant 0 : index
    %42 = vector.load %arg7[%c0_21, %c0_22, %c0_23, %c0_24] : memref<1x1x4x1xf32, #tpu.memory_space<vmem>>, vector<1x1x4x1xf32>
    %43 = vector.shape_cast %42 : vector<1x1x4x1xf32> to vector<4x1xf32>
    %cst_25 = arith.constant dense<0.000000e+00> : vector<4xf32>
    %44 = vector.multi_reduction <add>, %33, %cst_25 [1] : vector<4x256xf32> to vector<4xf32>
    %45 = vector.shape_cast %44 : vector<4xf32> to vector<4x1xf32>
    %46 = arith.addf %43, %45 : vector<4x1xf32>
    %c0_26 = arith.constant 0 : index
    %c0_27 = arith.constant 0 : index
    %c0_28 = arith.constant 0 : index
    %c0_29 = arith.constant 0 : index
    %47 = vector.load %arg7[%c0_26, %c0_27, %c0_28, %c0_29] : memref<1x1x4x1xf32, #tpu.memory_space<vmem>>, vector<1x1x4x1xf32>
    %48 = vector.shape_cast %47 : vector<1x1x4x1xf32> to vector<4x1xf32>
    %49 = vector.shape_cast %46 : vector<4x1xf32> to vector<1x1x4x1xf32>
    tpu.vector_store %arg7[%c0_26, %c0_27, %c0_28, %c0_29], %49 {strides = array<i32>} : memref<1x1x4x1xf32, #tpu.memory_space<vmem>>, vector<1x1x4x1xf32>,
    %c0_30 = arith.constant 0 : index
    %c0_31 = arith.constant 0 : index
    %c0_32 = arith.constant 0 : index
    %c0_33 = arith.constant 0 : index
    %50 = vector.load %arg8[%c0_30, %c0_31, %c0_32, %c0_33] : memref<1x1x1x1xf32, #tpu.memory_space<vmem>>, vector<1x1x1x1xf32>
    %51 = vector.shape_cast %50 : vector<1x1x1x1xf32> to vector<1x1xf32>
    %cst_34 = arith.constant dense<0.000000e+00> : vector<1xf32>
    %52 = vector.multi_reduction <add>, %31, %cst_34 [1] : vector<1x256xf32> to vector<1xf32>
    %53 = vector.shape_cast %52 : vector<1xf32> to vector<1x1xf32>
    %54 = arith.addf %51, %53 : vector<1x1xf32>
    %c0_35 = arith.constant 0 : index
    %c0_36 = arith.constant 0 : index
    %c0_37 = arith.constant 0 : index
    %c0_38 = arith.constant 0 : index
    %55 = vector.load %arg8[%c0_35, %c0_36, %c0_37, %c0_38] : memref<1x1x1x1xf32, #tpu.memory_space<vmem>>, vector<1x1x1x1xf32>
    %56 = vector.shape_cast %55 : vector<1x1x1x1xf32> to vector<1x1xf32>
    %57 = vector.shape_cast %54 : vector<1x1xf32> to vector<1x1x1x1xf32>
    tpu.vector_store %arg8[%c0_35, %c0_36, %c0_37, %c0_38], %57 {strides = array<i32>} : memref<1x1x1x1xf32, #tpu.memory_space<vmem>>, vector<1x1x1x1xf32>,
    %c0_39 = arith.constant 0 : index
    %c0_40 = arith.constant 0 : index
    %c0_41 = arith.constant 0 : index
    %c0_42 = arith.constant 0 : index
    %58 = vector.load %arg9[%c0_39, %c0_40, %c0_41, %c0_42] : memref<1x1x1x1xf32, #tpu.memory_space<vmem>>, vector<1x1x1x1xf32>
    %59 = vector.shape_cast %58 : vector<1x1x1x1xf32> to vector<1x1xf32>
    %cst_43 = arith.constant dense<0.000000e+00> : vector<1xf32>
    %60 = vector.multi_reduction <add>, %9, %cst_43 [1] : vector<1x256xf32> to vector<1xf32>
    %61 = vector.shape_cast %60 : vector<1xf32> to vector<1x1xf32>
    %62 = arith.addf %59, %61 : vector<1x1xf32>
    %c0_44 = arith.constant 0 : index
    %c0_45 = arith.constant 0 : index
    %c0_46 = arith.constant 0 : index
    %c0_47 = arith.constant 0 : index
    %63 = vector.load %arg9[%c0_44, %c0_45, %c0_46, %c0_47] : memref<1x1x1x1xf32, #tpu.memory_space<vmem>>, vector<1x1x1x1xf32>
    %64 = vector.shape_cast %63 : vector<1x1x1x1xf32> to vector<1x1xf32>
    %65 = vector.shape_cast %62 : vector<1x1xf32> to vector<1x1x1x1xf32>
    tpu.vector_store %arg9[%c0_44, %c0_45, %c0_46, %c0_47], %65 {strides = array<i32>} : memref<1x1x1x1xf32, #tpu.memory_space<vmem>>, vector<1x1x1x1xf32>,
    return
  }
  func.func @transform_0(%arg0: i32, %arg1: i32, %arg2: i32) -> (i32, i32, i32) {
    %c1_i32 = arith.constant 1 : i32
    %0 = arith.muli %arg1, %c1_i32 : i32
    %1 = arith.addi %0, %arg2 : i32
    %c0_i32 = arith.constant 0 : i32
    %c0_i32_0 = arith.constant 0 : i32
    return %arg0, %c0_i32, %1 : i32, i32, i32
  }
  func.func @transform_1(%arg0: i32, %arg1: i32, %arg2: i32) -> (i32, i32, i32) {
    %c1_i32 = arith.constant 1 : i32
    %0 = arith.muli %arg1, %c1_i32 : i32
    %1 = arith.addi %0, %arg2 : i32
    %c0_i32 = arith.constant 0 : i32
    %c0_i32_0 = arith.constant 0 : i32
    return %arg0, %c0_i32, %1 : i32, i32, i32
  }
  func.func @transform_2(%arg0: i32, %arg1: i32, %arg2: i32) -> (i32, i32, i32) {
    %c1_i32 = arith.constant 1 : i32
    %0 = arith.muli %arg1, %c1_i32 : i32
    %1 = arith.addi %0, %arg2 : i32
    %c0_i32 = arith.constant 0 : i32
    %c0_i32_0 = arith.constant 0 : i32
    return %arg0, %c0_i32, %1 : i32, i32, i32
  }
  func.func @transform_3(%arg0: i32, %arg1: i32, %arg2: i32) -> (i32, i32, i32, i32) {
    %c0_i32 = arith.constant 0 : i32
    %c0_i32_0 = arith.constant 0 : i32
    %c0_i32_1 = arith.constant 0 : i32
    return %arg0, %arg1, %c0_i32, %c0_i32_0 : i32, i32, i32, i32
  }
  func.func @transform_4(%arg0: i32, %arg1: i32, %arg2: i32) -> (i32, i32, i32, i32) {
    %c0_i32 = arith.constant 0 : i32
    %c0_i32_0 = arith.constant 0 : i32
    %c0_i32_1 = arith.constant 0 : i32
    return %arg0, %arg1, %c0_i32, %c0_i32_0 : i32, i32, i32, i32
  }
  func.func @transform_5(%arg0: i32, %arg1: i32, %arg2: i32) -> (i32, i32, i32, i32) {
    %c0_i32 = arith.constant 0 : i32
    %c0_i32_0 = arith.constant 0 : i32
    %c0_i32_1 = arith.constant 0 : i32
    return %arg0, %arg1, %c0_i32, %c0_i32_0 : i32, i32, i32, i32
  }
  func.func @transform_6(%arg0: i32, %arg1: i32, %arg2: i32) -> (i32, i32, i32, i32) {
    %c0_i32 = arith.constant 0 : i32
    %c0_i32_0 = arith.constant 0 : i32
    %c0_i32_1 = arith.constant 0 : i32
    return %arg0, %arg1, %c0_i32, %c0_i32_0 : i32, i32, i32, i32
  }
}

</mosaic_0001>

<bundles_post_ra>
// kernel: tpu_custom_call.1
= control target key start
LH: loop header
LB: loop body
LE: loop exit
PB: predicated region body
PF: predicated region fallthrough
CT: control target
= control target key end

     0   :  { %12 = vsyncpa [#allocation3], 0  ;;  %s1239_s0 = inlined_call_operand.hbm [shape: f32[2,4,256], index: 0, kind: input, shape index: {}]   ;;  %s1240_s1 = inlined_call_operand.vmem [shape: s8[2,1,256], index: 1, kind: input, shape index: {}]   ;;  %s1241_s2 = inlined_call_operand.vmem [shape: f32[2,1,256], index: 2, kind: input, shape index: {}]   ;;  %s1242_s3 = inlined_call_operand.vmem [shape: f32[2,1,4,1], index: 3, kind: output, shape index: {0}]   ;;  %s1243_s4 = inlined_call_operand.vmem [shape: f32[2,1,4,1], index: 4, kind: output, shape index: {1}]   ;;  %s1244_s5 = inlined_call_operand.vmem [shape: f32[2,1,1,1], index: 5, kind: output, shape index: {2}]   ;;  %s1245_s6 = inlined_call_operand.vmem [shape: f32[2,1,1,1], index: 6, kind: output, shape index: {3}]  }
   0x1   :  { %14 = vsyncpa [#allocation3 + $0x1], 0  ;;  %s1039_s21 = smov 0   ;;  %s1041_s22 = smov 0  }
   0x2   :  { %s1043_s23 = smov 0   ;;  %s1045_s24 = smov 0  }
   0x3   :  { %s1047_s25 = smov 0   ;;  %s1049_s26 = smov 0  }
   0x4 LB: > { %s835_s27 = sadd.s32 4294967295, %s1000_s26   ;;  %s39_s28 = sadd.s32 1, %s996_s25  ;;  %s1000_s26 = sphi %s1049_s26, %s20_s26   ;;  %s996_s25 = sphi %s1047_s25, %s1255_s25   ;;  %s992_s24 = sphi %s1045_s24, %s1254_s24   ;;  %s988_s23 = sphi %s1043_s23, %s1253_s23   ;;  %s984_s22 = sphi %s1041_s22, %s1252_s22   ;;  %s980_s21 = sphi %s1039_s21, %s1251_s21  }
   0x5   : > { %p41_p0 = scmp.ge.s32.totalorder %s39_s28, 2  ;;  %s50_s29 = sadd.s32 1, %s988_s23 }
   0x6   : > { %p57_p1 = scmp.ne.s32.totalorder %s988_s23, %s984_s22  ;;  %p58_p2 = scmp.eq.s32.totalorder %s1000_s26, 0 }
   0x7   : > { %s1257_s28 = smov (%p41_p0, %s39_s28), 0  ;;  %p63_p4 = scmp.ne.s32.totalorder %s984_s22, %s980_s21 }
   0x8   : > { %p1075_p3 = por %p58_p2, %p57_p1  ;;  %s45_s7 = ssub.s32 %s996_s25, %s1257_s28 }
   0x9   : > { %p64_p5 = scmp.eq.s32.totalorder %s835_s27, 0  ;;  %p48_p6 = scmp.eq.s32.totalorder %s45_s7, 0 }
   0xa   : > { %p859_p8 = scmp.lt.s32.totalorder %s1000_s26, 2  ;;  %s259_s10 = sand.u32 1, %s988_s23  }
   0xb   : > { %p1082_p7 = por %p64_p5, %p63_p4  ;;  %s852_s11 = sshll.u32 %s996_s25, 7 }
   0xc   : > { %s1088_s9 = scalar_select %p48_p6, %s988_s23, %s50_s29  }
   0xd   : > { %s839_s12 = sshll.u32 %s259_s10, 3  ;;  %s1095_s15 = scalar_lea.hbm %s1239_s0, %s852_s11 }
   0xe   : > { %s263_s16 = scalar_lea.vmem [#allocation2], %s839_s12  ;;  %p1099_p9 = pnand %p859_p8, %p1075_p3 }
   0xf   : > { %s274_s17 = sshll.u32 %s263_s16, 4  ;;  %s260_s19 = scalar_lea.sflag [#allocation3], %s259_s10  ;;  %s1103_s17 = int_to_ptr.vmem [resolvable:$true] %s274_s17 }
  0x10   : > { %s920_s20 = scalar_lea.hbm %s1095_s15, 128  ;;  %p922_p13 = pneg %p1099_p9 }
  0x11   : > { %p921_p12 = scmp.ne.s32.totalorder %s1095_s15, %s920_s20  ;;  %s925_s29 = scalar_lea.hbm %s1239_s0, 256 }
  0x12   : > { %p926_p2 = scmp.lt.u32.totalorder %s1095_s15, %s1239_s0  ;;  %p927_p3 = scmp.lt.u32.totalorder %s925_s29, %s920_s20 }
  0x13   : > { %p923_p0 = pnand %p922_p13, %p921_p12  ;;  %p929_p5 = scmp.lt.u32.totalorder %s920_s20, %s1095_s15 }
  0x14   : > { %p928_p4 = por %p927_p3, %p926_p2 }
  0x15   : > { %p924_p1 = pneg %p923_p0 }
  0x16   : > { %p930_p6 = por %p929_p5, %p928_p4 }
  0x18   : > { %p931_p8 = pnand %p930_p6, %p924_p1 }
  0x1a   : > { %934 = shalt.err (!%p931_p8)
}
  0x1b   : > { %s935_s10 = scalar_lea.vmem %s1103_s17, 128  ;;  %s1002_s11 = smov [#allocation2]  }
  0x1c   : > { %p936_p12 = scmp.ne.s32.totalorder %s1103_s17, %s935_s10  ;;  %s940_s12 = sshll.u32 %s1002_s11, 4  ;;  %s941_s12 = int_to_ptr.vmem [resolvable:$false] %s940_s12 }
  0x1d   : > { %s942_s13 = scalar_lea.vmem %s941_s12, 256  ;;  %p943_p11 = scmp.lt.s32.totalorder %s1103_s17, %s941_s12 }
  0x1e   : > { %p938_p0 = pnand %p936_p12, %p922_p13  ;;  %p944_p2 = scmp.lt.s32.totalorder %s942_s13, %s935_s10 }
  0x20   : > { %p939_p10 = pneg %p938_p0  ;;  %p945_p3 = por %p944_p2, %p943_p11 }
  0x22   : > { %p946_p4 = pnand %p945_p3, %p939_p10 }
  0x24   : > { %949 = shalt.err (!%p946_p4)
}
  0x25   : > { %858 = dma.hbm_to_vmem [thread:$0]  (!%p1099_p9), %s1095_s15, 128, %s1103_s17, %s260_s19  }
  0x26   : > { %p1249_p1 = scmp.lt.s32.totalorder %s1000_s26, 3  ;;  %p1250_p5 = scmp.ge.s32.totalorder %s1000_s26, 1 }
  0x28   : > { %p308_p13 = pnand %p1250_p5, %p1249_p1 }
  0x29   : > { %s313_s14 = sand.u32 (!%p308_p13), 1, %s984_s22  }
  0x2a   : > { %311 = sbr.rel (%p308_p13) target bundleno = 270 (0x10e), region = 32  ;;  %s843_s16 = sshll.u32 (!%p308_p13), %s313_s14, 3 }
  0x2b   : > { %s314_s20 = scalar_lea.sflag (!%p308_p13), [#allocation3], %s313_s14  ;;  %s317_s21 = scalar_lea.vmem (!%p308_p13), [#allocation2], %s843_s16 }
  0x31   : > { %975 = dma.done.wait (%p1082_p7), %s314_s20, 128  }
  0x32   : > { %977 = vsyncadd (%p1082_p7), %s314_s20, 4294967168  ;;  %p389_p10 = scmp.lt.s32.totalorder %s992_s24, 1  ;;  %vm442_vm0 = vcmask 0   ;;  %vm476_vm1 = vcmask 1043456   ;;  %v1003_v0 = vmov 0.0   ;;  %v445_v1 = vld [vmem:[%s317_s21] sm:$0xff]  ;;  %v449_v8 = vlaneseq }
  0x33   : > { %v474_v2 = vcombine.high %v445_v1, %v445_v1  ;;  %v477_v3 = vsel %vm476_vm1, %v445_v1, -inf  ;;  %vm596_vm4 = vcmask 1040384   ;;  %vm439_vm5 = vcmask 3072  }
  0x34   : > { %s1259_s24 = smov (!%p389_p10, %s992_s24), 1  ;;  %v478_v4 = vrot.slane %v477_v3, 4  ;;  %v1162_v13 = vshrl.u32 %v449_v8, 7 }
  0x35   : > { %s1149_s18 = scalar_lea.vmem %s1244_s5, %s1259_s24  ;;  %v484_v5 = vsel %vm476_vm1, %v474_v2, -inf  ;;  %s844_s8 = sshll.u32 %s1259_s24, 1 }
  0x36   : > { %443 = vst.msk [vmem:[%s1149_s18] sm:$0x1] %vm442_vm0, %v1003_v0  ;;  %v479_v6 = vmax.f32 %v477_v3, %v478_v4  ;;  %v485_v7 = vrot.slane %v484_v5, 4  ;;  %s395_s29 = scalar_lea.vmem %s1240_s1, %s844_s8  ;;  %v1167_v20 = vsub.s32 0, %v1162_v13  ;;  %v457_v21 = vsub.s32 4, %v1162_v13  ;;  %s406_s10 = scalar_lea.vmem %s1241_s2, %s844_s8 }
  0x37   : > { %v446_v14 = vld [vmem:[%s395_s29] sm:$0x3]  ;;  %s846_s11 = sshll.u32 %s1259_s24, 2  ;;  %s434_s21 = scalar_lea.vmem %s1245_s6, %s1259_s24 }
  0x38   : > { %v480_v9 = vrot.slane %v479_v6, 2  ;;  %v486_v10 = vmax.f32 %v484_v5, %v485_v7  ;;  %v447_v19 = vunpack.c.0.s8 %v446_v14  ;;  %v448_v63 = vld [vmem:[%s406_s10] sm:$0x3]  ;;  %s415_s14 = scalar_lea.vmem %s1242_s3, %s846_s11  ;;  %s422_s8 = scalar_lea.vmem %s1243_s4, %s846_s11  ;;  %444 = vst.msk [vmem:[%s434_s21] sm:$0x1] %vm442_vm0, %v1003_v0 }
  0x39   : > { %440 = vst.msk [vmem:[%s415_s14] sm:$0xf] %vm439_vm5, %v1003_v0  ;;  %441 = vst.msk [vmem:[%s422_s8] sm:$0xf] %vm439_vm5, %v1003_v0 }
  0x3a   : > { %v481_v11 = vmax.f32 %v479_v6, %v480_v9  ;;  %v487_v12 = vrot.slane %v486_v10, 2  ;;  %v454_v24 = vrot.slane %v447_v19, %v1167_v20  ;;  %v458_v25 = vrot.slane %v447_v19, %v457_v21 }
  0x3b   : > { %v589_v9 = vrot.slane %v448_v63, %v1167_v20 }
  0x3c   : > { %v482_v15 = vrot.slane %v481_v11, 1  ;;  %v488_v16 = vmax.f32 %v486_v10, %v487_v12  ;;  %v462_v28 = vrot.slane %v454_v24, %v1167_v20  ;;  %v466_v29 = vrot.slane %v458_v25, %v1167_v20 }
  0x3d   : > { %v597_v21 = vsel %vm596_vm4, %v589_v9, 0.0 }
  0x3e   : > { %v1164_v17 = vmax.f32 %v481_v11, %v482_v15  ;;  %v489_v18 = vrot.slane %v488_v16, 1  ;;  %vm467_vm2 = vcmp.eq.s32.totalorder %v1162_v13, %v462_v28  ;;  %vm468_vm3 = vcmp.eq.s32.totalorder %v1162_v13, %v466_v29 }
  0x3f   : > { %v848_v30 = vsel %vm467_vm2, 1.0, %v1003_v0  ;;  %v849_v31 = vsel %vm468_vm3, 1.0, %v1003_v0 }
  0x40   : > { %v1170_v22 = vmax.f32 %v488_v16, %v489_v18  ;;  %v530_v32 = vmul.f32 %v848_v30, %v445_v1  ;;  %v531_v34 = vmul.f32 %v849_v31, %v474_v2  ;;  %v550_v12 = vcombine.low %v848_v30, %v849_v31 }
  0x42   : > { %v493_v23 = vcombine.low %v1164_v17, %v1170_v22  ;;  %v532_v39 = vsel %vm476_vm1, %v530_v32, 0.0  ;;  %v539_v42 = vsel %vm476_vm1, %v531_v34, 0.0  ;;  %v577_v32 = vld [vmem:[%s1149_s18] sm:$0x1] }
  0x43   : > { %v533_v45 = vrot.slane %v532_v39, 4  ;;  %v540_v46 = vrot.slane %v539_v42, 4 }
  0x44   : > { %v495_v26 = vsub.f32 %v445_v1, %v493_v23  ;;  %v592_v1 = vsub.s32 1, %v1162_v13 }
  0x45   : > { %v534_v51 = vadd.f32 %v533_v45, %v532_v39  ;;  %v541_v52 = vadd.f32 %v540_v46, %v539_v42 }
  0x46   : > { %v496_v27 = vmul.f32 1.442695, %v495_v26  ;;  %v593_v14 = vrot.slane %v448_v63, %v592_v1 }
  0x47   : > { %v535_v56 = vrot.slane %v534_v51, 2  ;;  %v542_v57 = vrot.slane %v541_v52, 2 }
  0x48   : > { %910 = vpow2.f32 %v496_v27  ;;  %v598_v23 = vsel %vm596_vm4, %v593_v14, 0.0 }
  0x49   : > { %v536_v58 = vadd.f32 %v535_v56, %v534_v51  ;;  %v543_v59 = vadd.f32 %v542_v57, %v541_v52  ;;  %v599_v27 = vadd.f32 %v598_v23, %v597_v21 }
  0x4b   : > { %v537_v60 = vrot.slane %v536_v58, 1  ;;  %v544_v61 = vrot.slane %v543_v59, 1 }
  0x4d   : > { %v538_v5 = vadd.f32 %v537_v60, %v536_v58  ;;  %v545_v8 = vadd.f32 %v544_v61, %v543_v59 }
  0x52   : > { %v911_v33 = vpop.eup %910 }
  0x53   : > { %v499_v35 = vcombine.high %v911_v33, %v911_v33  ;;  %v501_v36 = vsel %vm476_vm1, %v911_v33, 0.0 }
  0x54   : > { %v502_v37 = vrot.slane %v501_v36, 4 }
  0x55   : > { %v508_v38 = vsel %vm476_vm1, %v499_v35, 0.0  ;;  %v554_v35 = vld [vmem:[%s415_s14] sm:$0xf] }
  0x56   : > { %v503_v40 = vadd.f32 %v502_v37, %v501_v36  ;;  %v509_v41 = vrot.slane %v508_v38, 4  ;;  %v584_v36 = vld [vmem:[%s434_s21] sm:$0x1] }
  0x58   : > { %v504_v43 = vrot.slane %v503_v40, 2  ;;  %v510_v44 = vadd.f32 %v509_v41, %v508_v38  ;;  %v566_v41 = vld [vmem:[%s422_s8] sm:$0xf] }
  0x5a   : > { %v505_v47 = vadd.f32 %v504_v43, %v503_v40  ;;  %v511_v48 = vrot.slane %v510_v44, 2 }
  0x5c   : > { %v506_v49 = vrot.slane %v505_v47, 1  ;;  %v512_v50 = vadd.f32 %v511_v48, %v510_v44 }
  0x5e   : > { %v507_v53 = vadd.f32 %v506_v49, %v505_v47  ;;  %v513_v54 = vrot.slane %v512_v50, 1 }
  0x60   : > { %v514_v55 = vadd.f32 %v513_v54, %v512_v50  ;;  %912 = vrcp.f32 %v507_v53 }
  0x61   : > { %914 = vlog2.f32 %v507_v53 }
  0x62   : > { %916 = vlog2.f32 %v514_v55 }
  0x63   : > { %918 = vrcp.f32 %v514_v55 }
  0x6a   : > { %v913_v62 = vpop.eup %912 }
  0x6b   : > { %v915_v2 = vpop.eup %914 }
  0x6c   : > { %v917_v3 = vpop.eup %916  ;;  %v525_v4 = vmul.f32 0.6931472, %v915_v2 }
  0x6d   : > { %v919_v6 = vpop.eup %918  ;;  %v527_v7 = vmul.f32 0.6931472, %v917_v3 }
  0x6e   : > { %v528_v10 = vadd.f32 %v525_v4, %v1164_v17  ;;  %v521_v11 = vcombine.low %v913_v62, %v919_v6 }
  0x6f   : > { %v529_v15 = vadd.f32 %v527_v7, %v1170_v22 }
  0x70   : > { %v546_v16 = vsub.f32 %v528_v10, %v538_v5  ;;  %v523_v18 = vmul.f32 %v911_v33, %v521_v11 }
  0x71   : > { %v547_v13 = vsub.f32 %v529_v15, %v545_v8 }
  0x72   : > { %v552_v19 = vmul.f32 %v550_v12, %v523_v18  ;;  %v553_v24 = vadd.f32 %v550_v12, %v523_v18 }
  0x73   : > { %v578_v25 = vadd.f32 %v547_v13, %v546_v16 }
  0x74   : > { %v556_v26 = vcombine.high %v552_v19, %v552_v19  ;;  %v558_v20 = vsel %vm476_vm1, %v552_v19, 0.0  ;;  %v568_v17 = vcombine.high %v553_v24, %v553_v24  ;;  %v570_v22 = vsel %vm476_vm1, %v553_v24, 0.0 }
  0x75   : > { %579 = vadd.xlane.f32.xlu1 %v578_v25 }
  0x76   : > { %v559_v28 = vsel %vm476_vm1, %v556_v26, 0.0  ;;  %v571_v29 = vsel %vm476_vm1, %v568_v17, 0.0 }
  0x77   : > { %v560_v30 = vadd.f32 %v559_v28, %v558_v20  ;;  %v572_v31 = vadd.f32 %v571_v29, %v570_v22 }
  0x79   : > { %561 = vadd.xlane.f32.xlu0 %v560_v30  ;;  %600 = vadd.xlane.f32.xlu1 %v599_v27 }
  0x7d   : > { %573 = vadd.xlane.f32.xlu0 %v572_v31 }
 0x102   : > { %v580_v33 = vpop.xlane.xlu1 %579 }
 0x103   : > { %v581_v34 = vadd.f32 %v580_v33, %v577_v32 }
 0x105   : > { %583 = vst.msk [vmem:[%s1149_s18] sm:$0x1] %vm442_vm0, %v581_v34 }
 0x106   : > { %v562_v37 = vpop.xlane.xlu0 %561  ;;  %v601_v38 = vpop.xlane.xlu1 %600 }
 0x107   : > { %v563_v39 = vadd.f32 %v562_v37, %v554_v35  ;;  %v602_v40 = vadd.f32 %v601_v38, %v584_v36 }
 0x109   : > { %565 = vst.msk [vmem:[%s415_s14] sm:$0xf] %vm439_vm5, %v563_v39 }
 0x10a   : > { %603 = vst.msk [vmem:[%s434_s21] sm:$0x1] %vm442_vm0, %v602_v40  ;;  %v574_v42 = vpop.xlane.xlu0 %573 }
 0x10b   : > { %v575_v43 = vadd.f32 %v574_v42, %v566_v41 }
 0x10d   : > { %576 = vst.msk [vmem:[%s422_s8] sm:$0xf] %vm439_vm5, %v575_v43 }
 0x10e PF: > { %s20_s26 = sadd.s32 1, %s1000_s26   ;;  %s1251_s21 = smov %s984_s22 }
 0x10f   : > { %p17_p7 = scmp.ge.s32.totalorder %s20_s26, 4   ;;  %s1252_s22 = smov %s988_s23 }
 0x110   : > { %s1253_s23 = smov %s1088_s9  ;;  %s1254_s24 = smov %s996_s25 }
 0x111   : > { %s1255_s25 = smov %s1257_s28  ;;  %19 = sbr.rel (!%p17_p7) target bundleno = 4 (0x4), region = 118 }
 0x118   :  { %685 = vsyncpa [#allocation3], 1 }
 0x119   :  { %687 = vsyncpa [#allocation3 + $0x1], 1 }

</bundles_post_ra>
